<compile_context>
chip_gen: v7x
topology: tpu7x:2x2x1
jax: 0.10.0
libtpu: 0.0.40
codegen_flags: <defaults>
</compile_context>

<pallas_src>
import functools

import jax
import jax.numpy as jnp
from jax.experimental import pallas as pl
from jax.experimental.pallas import tpu as pltpu


def _soft_jaccard_kernel(out_ref, tgt_ref, partial_ref, *, tile_batch, total_n,
                         mask_tail):
    """One grid step: (tile_batch, C) rows -> one (1, 1) partial loss sum."""
    x = out_ref[...].astype(jnp.float32)
    t = tgt_ref[...].astype(jnp.float32)

    s = jax.nn.sigmoid(x)                                   # torch.sigmoid(outputs)
    prod = s * t                                            # outputs * targets
    inter = jnp.sum(prod, axis=1, keepdims=True)            # .sum(dim=1)
    union = jnp.sum(s + t - prod, axis=1, keepdims=True)    # .sum(dim=1)

    eps = jnp.float32(1e-07)
    per_sample = 1.0 - (inter + eps) / (union + eps)        # (tile_batch, 1)

    if mask_tail:
        # Rows past the real batch (tail-tile padding / OOB reads) contribute 0.
        i = pl.program_id(0)
        row = jax.lax.broadcasted_iota(jnp.int32, per_sample.shape, 0)
        valid = (i * tile_batch + row) < total_n
        per_sample = jnp.where(valid, per_sample, jnp.float32(0.0))

    partial_ref[...] = jnp.sum(per_sample).reshape(1, 1)


def _choose_tile_batch(n, c, itemsize, requested):
    """Pick a batch-tile size: big enough to hit the HBM roofline, small enough
    to stay well under the default scoped-VMEM limit with double buffering."""
    if requested is None:
        # 2 inputs x 2 pipeline buffers x tb x c x itemsize <= ~8 MiB, cap 1024
        # rows (measured mem-bound kernels are ~85%+ of roofline by 512-1024).
        budget_bytes = 8 * 1024 * 1024
        tb = budget_bytes // max(1, 4 * c * itemsize)
        tb = max(8, min(tb, 1024))
    else:
        tb = max(1, int(requested))
    if n <= tb:
        # Single block covering the whole batch (block dim == full array dim,
        # grid=(1,)) — also the fast path for tiny inputs like the demo.
        return n
    # Sub-array blocks: keep the sublane dim a multiple of 8.
    return max(8, (tb // 8) * 8)


def soft_jaccard_loss(outputs, targets, *, tile_batch=None):
    """Pallas-backed SoftJaccardLoss. outputs, targets: (N, C), any float dtype."""
    assert outputs.shape == targets.shape and outputs.ndim == 2
    n, c = outputs.shape

    tb = _choose_tile_batch(n, c, jnp.dtype(outputs.dtype).itemsize, tile_batch)
    num_blocks = pl.cdiv(n, tb)
    mask_tail = (n % tb) != 0

    kernel = functools.partial(
        _soft_jaccard_kernel, tile_batch=tb, total_n=n, mask_tail=mask_tail)

    partials = pl.pallas_call(
        kernel,
        out_shape=jax.ShapeDtypeStruct((num_blocks, 1), jnp.float32),
        grid_spec=pltpu.PrefetchScalarGridSpec(
            num_scalar_prefetch=0,
            grid=(num_blocks,),
            in_specs=[
                pl.BlockSpec((tb, c), lambda i: (i, 0)),
                pl.BlockSpec((tb, c), lambda i: (i, 0)),
            ],
            out_specs=pl.BlockSpec((1, 1), lambda i: (i, 0)),
        ),
        compiler_params=pltpu.CompilerParams(
            # Each step writes its own output block and carries no state, so
            # the batch axis is truly parallel (v7x megacore-shardable).
            dimension_semantics=("parallel",),
        ),
    )(outputs, targets)

    # Final reduce + mean over the batch (tiny, done in XLA).
    return jnp.sum(partials) / jnp.float32(n)


def soft_jaccard_loss_ref(outputs, targets):
    """Pure-JAX reference matching the PyTorch forward exactly."""
    eps = 1e-07
    s = jax.nn.sigmoid(outputs.astype(jnp.float32))
    t = targets.astype(jnp.float32)
    inter = jnp.sum(s * t, axis=1)
    union = jnp.sum(s + t - s * t, axis=1)
    loss = 1.0 - (inter + eps) / (union + eps)
    return jnp.mean(loss)


if __name__ == "__main__":
    key = jax.random.PRNGKey(0)
    k1, k2, k3, k4 = jax.random.split(key, 4)

    # Small demo consistent with the module's usage (AwA2: 85 attribute logits).
    N, C = 16, 85
    outputs = jax.random.normal(k1, (N, C), dtype=jnp.float32)
    targets = (jax.random.uniform(k2, (N, C)) > 0.5).astype(jnp.float32)

    loss = jax.block_until_ready(soft_jaccard_loss(outputs, targets))
    ref = jax.block_until_ready(soft_jaccard_loss_ref(outputs, targets))
    assert jnp.allclose(loss, ref, atol=1e-5, rtol=1e-5), (loss, ref)

    # Also exercise the multi-block + tail-mask path (N not divisible by tile).
    N2, C2 = 300, 85
    outputs2 = jax.random.normal(k3, (N2, C2), dtype=jnp.float32)
    targets2 = (jax.random.uniform(k4, (N2, C2)) > 0.5).astype(jnp.float32)
    loss2 = jax.block_until_ready(
        soft_jaccard_loss(outputs2, targets2, tile_batch=128))
    ref2 = jax.block_until_ready(soft_jaccard_loss_ref(outputs2, targets2))
    assert jnp.allclose(loss2, ref2, atol=1e-5, rtol=1e-5), (loss2, ref2)

    print("KERNEL_OK")
</pallas_src>

<mosaic_0001>
module attributes {stable_mosaic.version = 11 : i64} {
  func.func @_soft_jaccard_kernel(%arg0: i32, %arg1: memref<16x85xf32, #tpu.memory_space<vmem>>, %arg2: memref<16x85xf32, #tpu.memory_space<vmem>>, %arg3: memref<1x1xf32, #tpu.memory_space<vmem>>) attributes {dimension_semantics = [#tpu.dimension_semantics<parallel>], iteration_bounds = array<i64: 1>, scalar_prefetch = 0 : i64, scratch_operands = 0 : i64, tpu.core_type = #tpu.core_type<tc>, window_params = [{transform_indices = @transform_0, window_bounds = array<i64: 16, 85>}, {transform_indices = @transform_1, window_bounds = array<i64: 16, 85>}, {transform_indices = @transform_2, window_bounds = array<i64: 1, 1>}]} {
    %c0 = arith.constant 0 : index
    %c0_0 = arith.constant 0 : index
    %0 = vector.load %arg1[%c0, %c0_0] : memref<16x85xf32, #tpu.memory_space<vmem>>, vector<16x85xf32>
    %c0_1 = arith.constant 0 : index
    %c0_2 = arith.constant 0 : index
    %1 = vector.load %arg2[%c0_1, %c0_2] : memref<16x85xf32, #tpu.memory_space<vmem>>, vector<16x85xf32>
    %2 = arith.negf %0 : vector<16x85xf32>
    %3 = math.exp %2 : vector<16x85xf32>
    %cst = arith.constant 1.000000e+00 : f32
    %4 = vector.broadcast %cst : f32 to vector<16x85xf32>
    %5 = arith.addf %4, %3 : vector<16x85xf32>
    %6 = arith.divf %4, %5 : vector<16x85xf32>
    %7 = arith.mulf %6, %1 : vector<16x85xf32>
    %cst_3 = arith.constant dense<0.000000e+00> : vector<16xf32>
    %8 = vector.multi_reduction <add>, %7, %cst_3 [1] : vector<16x85xf32> to vector<16xf32>
    %9 = vector.shape_cast %8 : vector<16xf32> to vector<16x1xf32>
    %10 = arith.addf %6, %1 : vector<16x85xf32>
    %11 = arith.subf %10, %7 : vector<16x85xf32>
    %cst_4 = arith.constant dense<0.000000e+00> : vector<16xf32>
    %12 = vector.multi_reduction <add>, %11, %cst_4 [1] : vector<16x85xf32> to vector<16xf32>
    %13 = vector.shape_cast %12 : vector<16xf32> to vector<16x1xf32>
    %cst_5 = arith.constant 1.000000e-07 : f32
    %14 = vector.broadcast %cst_5 : f32 to vector<16x1xf32>
    %15 = arith.addf %9, %14 : vector<16x1xf32>
    %cst_6 = arith.constant 1.000000e-07 : f32
    %16 = vector.broadcast %cst_6 : f32 to vector<16x1xf32>
    %17 = arith.addf %13, %16 : vector<16x1xf32>
    %18 = arith.divf %15, %17 : vector<16x1xf32>
    %cst_7 = arith.constant 1.000000e+00 : f32
    %19 = vector.broadcast %cst_7 : f32 to vector<16x1xf32>
    %20 = arith.subf %19, %18 : vector<16x1xf32>
    %21 = vector.shape_cast %20 : vector<16x1xf32> to vector<1x16x1xf32>
    %cst_8 = arith.constant dense<0.000000e+00> : vector<1xf32>
    %22 = vector.multi_reduction <add>, %21, %cst_8 [1, 2] : vector<1x16x1xf32> to vector<1xf32>
    %23 = vector.shape_cast %22 : vector<1xf32> to vector<1x1x1xf32>
    %24 = vector.extract %23[0, 0, 0] : f32 from vector<1x1x1xf32>
    %25 = vector.broadcast %24 : f32 to vector<1x1xf32>
    %c0_9 = arith.constant 0 : index
    %c0_10 = arith.constant 0 : index
    %26 = vector.load %arg3[%c0_9, %c0_10] : memref<1x1xf32, #tpu.memory_space<vmem>>, vector<1x1xf32>
    tpu.vector_store %arg3[%c0_9, %c0_10], %25 {strides = array<i32>} : memref<1x1xf32, #tpu.memory_space<vmem>>, vector<1x1xf32>,
    return
  }
  func.func @transform_0(%arg0: i32) -> (i32, i32) {
    %c0_i32 = arith.constant 0 : i32
    %c0_i32_0 = arith.constant 0 : i32
    return %arg0, %c0_i32 : i32, i32
  }
  func.func @transform_1(%arg0: i32) -> (i32, i32) {
    %c0_i32 = arith.constant 0 : i32
    %c0_i32_0 = arith.constant 0 : i32
    return %arg0, %c0_i32 : i32, i32
  }
  func.func @transform_2(%arg0: i32) -> (i32, i32) {
    %c0_i32 = arith.constant 0 : i32
    %c0_i32_0 = arith.constant 0 : i32
    return %arg0, %c0_i32 : i32, i32
  }
}

</mosaic_0001>

<bundles_post_ra>
// kernel: tpu_custom_call.1
= control target key start
LH: loop header
LB: loop body
LE: loop exit
PB: predicated region body
PF: predicated region fallthrough
CT: control target
= control target key end

     0   :  { %7 = vsyncpa [#allocation3], 0  ;;  %s266_s0 = inlined_call_operand.hbm [shape: f32[16,85], index: 0, kind: input, shape index: {}]   ;;  %s267_s1 = inlined_call_operand.hbm [shape: f32[16,85], index: 1, kind: input, shape index: {}]   ;;  %s268_s2 = inlined_call_operand.hbm [shape: f32[1,1], index: 2, kind: output, shape index: {}]  }
   0x1   :  { %8 = vsyncpa [#allocation6], 0 }
   0x2   :  { %9 = vsyncpa [#allocation4], 0  ;;  %s210_s9 = smov [#allocation2]   ;;  %s138_s13 = scalar_lea.hbm %s266_s0, 256 }
   0x3   :  { %s15_s10 = sshll.u32 %s210_s9, 4  ;;  %p139_p0 = scmp.ne.s32.totalorder %s266_s0, %s138_s13  ;;  %s16_s10 = int_to_ptr.vmem [resolvable:$true] %s15_s10 }
   0x4   :  { %p142_p1 = scmp.lt.u32.totalorder %s138_s13, %s266_s0 }
   0x6   :  { %p144_p2 = pnand %p142_p1, %p139_p0 }
   0x8   :  { %147 = shalt.err (!%p144_p2)
}
   0x9   :  { %s148_s18 = scalar_lea.vmem %s16_s10, 256  ;;  %p153_p4 = scmp.lt.s32.totalorder %s16_s10, %s16_s10 }
   0xa   :  { %p149_p3 = scmp.ne.s32.totalorder %s16_s10, %s148_s18  ;;  %p154_p5 = scmp.lt.s32.totalorder %s148_s18, %s148_s18 }
   0xc   :  { %p155_p6 = por %p154_p5, %p153_p4 }
   0xe   :  { %p156_p7 = pnand %p155_p6, %p149_p3 }
  0x10   :  { %159 = shalt.err (!%p156_p7)
}
  0x11   :  { %s211_s19 = smov 128   ;;  %s212_s20 = smov 8  }
  0x12   :  { %21 = dma.hbm_to_vmem [thread:$0]  %s266_s0, 256, %s16_s10, [#allocation3], %s211_s19, %s211_s19, %s212_s20  }
  0x13   :  { %s213_s23 = smov [#allocation5]   ;;  %s160_s27 = scalar_lea.hbm %s267_s1, 256 }
  0x14   :  { %s27_s24 = sshll.u32 %s213_s23, 4  ;;  %p161_p8 = scmp.ne.s32.totalorder %s267_s1, %s160_s27  ;;  %s28_s24 = int_to_ptr.vmem [resolvable:$true] %s27_s24 }
  0x15   :  { %p164_p9 = scmp.lt.u32.totalorder %s160_s27, %s267_s1 }
  0x17   :  { %p166_p10 = pnand %p164_p9, %p161_p8 }
  0x19   :  { %169 = shalt.err (!%p166_p10)
}
  0x1a   :  { %s170_s4 = scalar_lea.vmem %s28_s24, 256  ;;  %p175_p12 = scmp.lt.s32.totalorder %s28_s24, %s28_s24 }
  0x1b   :  { %p171_p11 = scmp.ne.s32.totalorder %s28_s24, %s170_s4  ;;  %p176_p13 = scmp.lt.s32.totalorder %s170_s4, %s170_s4 }
  0x1d   :  { %p177_p0 = por %p176_p13, %p175_p12 }
  0x1f   :  { %p178_p1 = pnand %p177_p0, %p171_p11 }
  0x21   :  { %181 = shalt.err (!%p178_p1)
}
  0x22   :  { %33 = dma.hbm_to_vmem [thread:$0]  %s267_s1, 256, %s28_s24, [#allocation6], %s211_s19, %s211_s19, %s212_s20  }
  0x23   :  { %204 = dma.done.wait [#allocation3], 256  }
  0x24   :  { %205 = vsyncadd [#allocation3], 4294967040 }
  0x25   :  { %206 = dma.done.wait [#allocation6], 256  }
  0x26   :  { %207 = vsyncadd [#allocation6], 4294967040  ;;  %v40_v0 = vld [vmem:[#allocation2] sm:$0xff]  ;;  %v41_v1 = vld [vmem:[#allocation2 + $0x8] sm:$0xff]  ;;  %vm58_vm0 = vcmask 695296   ;;  %vm85_vm1 = vcmask 7168  }
  0x27   :  { %v117_v2 = vmul.f32 -1.442695, %v40_v0  ;;  %v118_v3 = vmul.f32 -1.442695, %v41_v1  ;;  %v42_v8 = vld [vmem:[#allocation5] sm:$0xff]  ;;  %v43_v9 = vld [vmem:[#allocation5 + $0x8] sm:$0xff] }
  0x28   :  { %s214_s1 = smov [#allocation7]   ;;  %vm99_vm2 = vcmask 0  }
  0x29   :  { %126 = vpow2.f32 %v117_v2  ;;  %s107_s6 = sshll.u32 %s214_s1, 4  ;;  %s108_s6 = int_to_ptr.vmem [resolvable:$true] %s107_s6 }
  0x2a   :  { %128 = vpow2.f32 %v118_v3  ;;  %s182_s8 = scalar_lea.vmem %s108_s6, 16  ;;  %s186_s9 = scalar_lea.vmem %s108_s6, 32 }
  0x2b   :  { %p183_p2 = scmp.ne.s32.totalorder %s108_s6, %s182_s8  ;;  %p187_p3 = scmp.lt.s32.totalorder %s108_s6, %s108_s6 }
  0x2c   :  { %p188_p4 = scmp.lt.s32.totalorder %s186_s9, %s182_s8 }
  0x2e   :  { %p189_p5 = por %p188_p4, %p187_p3 }
  0x30   :  { %p190_p6 = pnand %p189_p5, %p183_p2 }
  0x33   :  { %v127_v4 = vpop.eup %126 }
  0x34   :  { %v129_v5 = vpop.eup %128  ;;  %v50_v6 = vadd.f32 1.0, %v127_v4 }
  0x35   :  { %v51_v7 = vadd.f32 1.0, %v129_v5 }
  0x36   :  { %130 = vrcp.f32 %v50_v6 }
  0x37   :  { %132 = vrcp.f32 %v51_v7 }
  0x40   :  { %v131_v10 = vpop.eup %130 }
  0x41   :  { %v133_v11 = vpop.eup %132  ;;  %v56_v12 = vmul.f32 %v131_v10, %v42_v8  ;;  %v65_v13 = vadd.f32 %v131_v10, %v42_v8 }
  0x42   :  { %v57_v14 = vmul.f32 %v133_v11, %v43_v9  ;;  %v66_v15 = vadd.f32 %v133_v11, %v43_v9 }
  0x43   :  { %v67_v16 = vsub.f32 %v65_v13, %v56_v12  ;;  %v59_v17 = vsel %vm58_vm0, %v56_v12, 0.0 }
  0x44   :  { %v68_v18 = vsub.f32 %v66_v15, %v57_v14  ;;  %60 = vadd.xlane.f32.xlu1 %v59_v17  ;;  %v62_v20 = vsel %vm58_vm0, %v57_v14, 0.0 }
  0x45   :  { %v69_v19 = vsel %vm58_vm0, %v67_v16, 0.0 }
  0x46   :  { %70 = vadd.xlane.f32.xlu0 %v69_v19  ;;  %v72_v21 = vsel %vm58_vm0, %v68_v18, 0.0 }
  0x48   :  { %63 = vadd.xlane.f32.xlu1 %v62_v20 }
  0x4a   :  { %73 = vadd.xlane.f32.xlu0 %v72_v21 }
  0xd1   :  { %v61_v26 = vpop.xlane.xlu1 %60 }
  0xd2   :  { %v75_v27 = vadd.f32 1e-07, %v61_v26 }
  0xd3   :  { %v71_v22 = vpop.xlane.xlu0 %70 }
  0xd4   :  { %v77_v23 = vadd.f32 1e-07, %v71_v22 }
  0xd5   :  { %v64_v28 = vpop.xlane.xlu1 %63 }
  0xd6   :  { %134 = vrcp.f32 %v77_v23  ;;  %v76_v31 = vadd.f32 1e-07, %v64_v28 }
  0xd7   :  { %v74_v24 = vpop.xlane.xlu0 %73 }
  0xd8   :  { %v78_v25 = vadd.f32 1e-07, %v74_v24 }
  0xda   :  { %136 = vrcp.f32 %v78_v25 }
  0xe0   :  { %v135_v29 = vpop.eup %134 }
  0xe1   :  { %v80_v30 = vmul.f32 %v135_v29, %v75_v27 }
  0xe3   :  { %v83_v33 = vsub.f32 1.0, %v80_v30 }
  0xe4   :  { %v137_v32 = vpop.eup %136 }
  0xe5   :  { %v82_v34 = vmul.f32 %v137_v32, %v76_v31  ;;  %v86_v36 = vsel %vm85_vm1, %v83_v33, 0.0 }
  0xe7   :  { %v84_v35 = vsub.f32 1.0, %v82_v34 }
  0xe9   :  { %v87_v37 = vsel %vm85_vm1, %v84_v35, 0.0 }
  0xea   :  { %v88_v38 = vadd.f32 %v87_v37, %v86_v36 }
  0xec   :  { %89 = vadd.xlane.f32.xlu0 %v88_v38 }
 0x179   :  { %v90_v39 = vpop.xlane.xlu0 %89 }
 0x17a   :  { %v91_v40 = vrot.slane %v90_v39, 4 }
 0x17c   :  { %v92_v41 = vadd.f32 %v91_v40, %v90_v39 }
 0x17e   :  { %v93_v42 = vrot.slane %v92_v41, 2 }
 0x180   :  { %v94_v43 = vadd.f32 %v93_v42, %v92_v41 }
 0x182   :  { %v95_v44 = vrot.slane %v94_v43, 1 }
 0x184   :  { %v96_v45 = vadd.f32 %v95_v44, %v94_v43 }
 0x186   :  { %119 = vpush %v96_v45 }
 0x1b7   :  { %s120_s7 = spop %119 }
 0x1b8   :  { %v98_v46 = vstv %s120_s7 }
 0x1b9   :  { %100 = vst.msk [vmem:[#allocation7] sm:$0x1] %vm99_vm2, %v98_v46 }
 0x1ba   :  { %193 = shalt.err (!%p190_p6)
}
 0x1bb   :  { %s194_s12 = scalar_lea.hbm %s268_s2, 16 }
 0x1bc   :  { %p195_p7 = scmp.ne.s32.totalorder %s268_s2, %s194_s12  ;;  %p198_p8 = scmp.lt.u32.totalorder %s194_s12, %s268_s2 }
 0x1be   :  { %p200_p9 = pnand %p198_p8, %p195_p7 }
 0x1c0   :  { %203 = shalt.err (!%p200_p9)
}
 0x1c1   :  { %110 = dma.vmem_to_hbm [thread:$0]  %s108_s6, 16, %s268_s2, [#allocation4]  }
 0x1c2   :  { %208 = dma.done.wait [#allocation4], 16  }
 0x1c3   :  { %209 = vsyncadd [#allocation4], 4294967280 }
 0x1c4   :  { %114 = vsyncpa [#allocation3], 1 }
 0x1c5   :  { %115 = vsyncpa [#allocation6], 1 }
 0x1c6   :  { %116 = vsyncpa [#allocation4], 1 }

</bundles_post_ra>
